<compile_context>
chip_gen: v7x
topology: tpu7x:2x2x1
jax: 0.10.0
libtpu: 0.0.40
codegen_flags: <defaults>
</compile_context>

<pallas_src>
import jax
import jax.numpy as jnp
from jax.experimental import pallas as pl
from jax.experimental.pallas import tpu as pltpu


def _round_up(x: int, m: int) -> int:
    return ((x + m - 1) // m) * m


def _autoencoder_kernel(x_ref, we_ref, be_ref, wd_ref, bd_ref, bott_ref, rec_ref):
    # encoder: relu(x @ We + be)
    # Cast LHS to the weight dtype so bf16 weights hit the native bf16 MXU path
    # (f32 accumulation preserved via preferred_element_type). Biases arrive f32.
    bott = jnp.dot(x_ref[...].astype(we_ref.dtype), we_ref[...],
                   preferred_element_type=jnp.float32)
    bott = jnp.maximum(bott + be_ref[...], 0.0)
    bott_ref[...] = bott.astype(bott_ref.dtype)

    # decoder: relu(bottleneck @ Wd + bd)
    rec = jnp.dot(bott.astype(wd_ref.dtype), wd_ref[...],
                  preferred_element_type=jnp.float32)
    rec = jnp.maximum(rec + bd_ref[...], 0.0)
    rec_ref[...] = rec.astype(rec_ref.dtype)


def _vmem_capacity_bytes() -> int:
    try:
        return int(pltpu.get_tpu_info().vmem_capacity_bytes)
    except Exception:
        return 64 * 1024 * 1024  # conservative (v7x per-core VMEM)


def _resident_bytes(dt: int, db: int, w_bytes: int) -> int:
    # Single-buffered weights (Buffered(1)) + f32 biases.
    return (dt * db + db * dt) * w_bytes + (db + dt) * 4


def _per_row_bytes(dt: int, db: int, x_bytes: int, out_bytes: int) -> int:
    # Per batch-tile row: x tile (double-buffered) + both output tiles
    # (double-buffered) + f32 intermediates.
    return 2 * dt * x_bytes + 2 * (db + dt) * out_bytes + (db + dt) * 4


def autoencoder_forward(x, student_input, params, *, max_tile_b=1024):
    """Pallas equivalent of AutoEncoder.forward(x, student_input).

    Returns (bottleneck, reconstructed, None). `student_input` and the
    `reduction` params are unused in the forward pass, exactly like the
    reference module.
    """
    del student_input  # unused in forward, as in the PyTorch module
    we, be, wd, bd = (params["enc_w"], params["enc_b"],
                      params["dec_w"], params["dec_b"])
    B, Dt = x.shape
    Db = we.shape[1]

    # Lane-dense / MXU-friendly feature dims: pad Dt and Db to multiples of 128.
    # Zero padding keeps the math exact (padded columns of the bottleneck are
    # relu(0 + 0) = 0 and contribute nothing to the decoder matmul).
    Dt_p = _round_up(Dt, 128)
    Db_p = _round_up(Db, 128)
    if Dt_p != Dt or Db_p != Db:
        x = jnp.pad(x, ((0, 0), (0, Dt_p - Dt)))
        we = jnp.pad(we, ((0, Dt_p - Dt), (0, Db_p - Db)))
        be = jnp.pad(be, ((0, Db_p - Db),))
        wd = jnp.pad(wd, ((0, Db_p - Db), (0, Dt_p - Dt)))
        bd = jnp.pad(bd, ((0, Dt_p - Dt),))

    x_bytes = jnp.dtype(x.dtype).itemsize
    w_bytes = jnp.dtype(we.dtype).itemsize
    out_bytes = x_bytes

    # Sublane granule: packed dtypes need more rows per vreg (8 f32 / 16 bf16 / 32 i8).
    sub = max(8, 32 // x_bytes)

    # Generation-aware VMEM budget -> batch tile size.
    vmem_cap = _vmem_capacity_bytes()
    budget = int(vmem_cap * 0.75)  # headroom for compiler scratch / pipeline state
    resident = _resident_bytes(Dt_p, Db_p, w_bytes)
    # TODO(synk): add a K-reduction grid axis (f32 accumulator, pl.when
    # init/finalize, axis "arbitrary") when `resident` alone approaches the VMEM
    # budget (very large teacher dims on v7x); full-weight residency assumed here.
    row_bytes = _per_row_bytes(Dt_p, Db_p, x_bytes, out_bytes)
    tb_budget = max((budget - resident) // row_bytes, sub)

    b_sub = _round_up(B, sub)
    tb = min(int(max_tile_b), int(tb_budget), b_sub)
    tb = max((tb // sub) * sub, sub)
    # Megacore: guarantee >= 2 grid steps when the batch allows, so
    # dimension_semantics=("parallel",) shards across both v7x TensorCores and
    # DMA/compute overlap exists on single-core chips too.
    if b_sub >= 2 * sub:
        tb = min(tb, _round_up(pl.cdiv(b_sub, 2), sub))
    tb = max(tb, sub)

    B_pad = _round_up(B, tb)
    x_in = x if B_pad == B else jnp.pad(x, ((0, B_pad - B), (0, 0)))

    # Biases: pre-cast to f32 once (kernel adds them straight into the f32 acc).
    be2 = be.reshape(1, Db_p).astype(jnp.float32)
    bd2 = bd.reshape(1, Dt_p).astype(jnp.float32)

    grid = (B_pad // tb,)

    # Resident (constant index_map, single-buffered) weights/biases;
    # batch-tiled (double-buffered) x and outputs.
    resident_mode = pl.Buffered(1)
    in_specs = [
        pl.BlockSpec((tb, Dt_p), lambda i: (i, 0)),                              # x tile
        pl.BlockSpec((Dt_p, Db_p), lambda i: (0, 0), pipeline_mode=resident_mode),  # enc W
        pl.BlockSpec((1, Db_p), lambda i: (0, 0), pipeline_mode=resident_mode),     # enc b
        pl.BlockSpec((Db_p, Dt_p), lambda i: (0, 0), pipeline_mode=resident_mode),  # dec W
        pl.BlockSpec((1, Dt_p), lambda i: (0, 0), pipeline_mode=resident_mode),     # dec b
    ]
    out_specs = (
        pl.BlockSpec((tb, Db_p), lambda i: (i, 0)),   # bottleneck tile
        pl.BlockSpec((tb, Dt_p), lambda i: (i, 0)),   # reconstruction tile
    )

    flops = 4 * B_pad * Dt_p * Db_p  # two matmuls, 2*M*N*K each
    bytes_accessed = (
        B_pad * Dt_p * x_bytes
        + 2 * Dt_p * Db_p * w_bytes + (Db_p + Dt_p) * 4
        + B_pad * (Db_p + Dt_p) * out_bytes
    )

    vmem_used = resident + tb * row_bytes
    vmem_limit = int(min(max(int(1.25 * vmem_used), 4 * 1024 * 1024), vmem_cap))

    bottleneck, reconstructed = pl.pallas_call(
        _autoencoder_kernel,
        grid=grid,
        in_specs=in_specs,
        out_specs=out_specs,
        out_shape=(
            jax.ShapeDtypeStruct((B_pad, Db_p), x.dtype),
            jax.ShapeDtypeStruct((B_pad, Dt_p), x.dtype),
        ),
        compiler_params=pltpu.CompilerParams(
            dimension_semantics=("parallel",),   # megacore split on v7x
            vmem_limit_bytes=vmem_limit,
        ),
        cost_estimate=pl.CostEstimate(
            flops=flops, transcendentals=0, bytes_accessed=bytes_accessed),
    )(x_in, we, be2, wd, bd2)

    bottleneck = bottleneck[:B, :Db]
    reconstructed = reconstructed[:B, :Dt]
    return bottleneck, reconstructed, None


def init_params(key, input_dim_teacher, bottleneck_dim, input_dim_student=768,
                dtype=jnp.float32):
    """Deterministic synthetic parameter init (uniform, like nn.Linear default)."""
    ks = jax.random.split(key, 6)

    def linear(k_w, k_b, fan_in, fan_out):
        bound = 1.0 / jnp.sqrt(fan_in)
        # stored as (in, out) so forward is x @ W + b
        w = jax.random.uniform(k_w, (fan_in, fan_out), dtype, -bound, bound)
        b = jax.random.uniform(k_b, (fan_out,), dtype, -bound, bound)
        return w, b

    enc_w, enc_b = linear(ks[0], ks[1], input_dim_teacher, bottleneck_dim)
    dec_w, dec_b = linear(ks[2], ks[3], bottleneck_dim, input_dim_teacher)
    red_w, red_b = linear(ks[4], ks[5], input_dim_student, bottleneck_dim)
    return {
        "enc_w": enc_w, "enc_b": enc_b,
        "dec_w": dec_w, "dec_b": dec_b,
        # present for parity with the module's __init__; unused in forward
        "red_w": red_w, "red_b": red_b,
    }


def _reference(x, params):
    bott = jnp.maximum(x @ params["enc_w"] + params["enc_b"], 0.0)
    rec = jnp.maximum(bott @ params["dec_w"] + params["dec_b"], 0.0)
    return bott, rec


if __name__ == "__main__":
    # Small shapes consistent with the module's forward:
    # x: (batch, input_dim_teacher), student_input: (batch, input_dim_student)
    batch = 8
    input_dim_teacher = 256
    bottleneck_dim = 128
    input_dim_student = 768

    key = jax.random.PRNGKey(0)
    k_x, k_s, k_p, k_x2, k_p2, k_x3 = jax.random.split(key, 6)

    x = jax.random.normal(k_x, (batch, input_dim_teacher), jnp.float32)
    student_input = jax.random.normal(k_s, (batch, input_dim_student), jnp.float32)
    params = init_params(k_p, input_dim_teacher, bottleneck_dim, input_dim_student)

    bottleneck, reconstructed, third = autoencoder_forward(x, student_input, params)
    jax.block_until_ready((bottleneck, reconstructed))

    ref_bott, ref_rec = _reference(x, params)
    assert third is None
    assert bottleneck.shape == (batch, bottleneck_dim)
    assert reconstructed.shape == (batch, input_dim_teacher)
    assert jnp.allclose(bottleneck, ref_bott, atol=1e-5, rtol=1e-5)
    assert jnp.allclose(reconstructed, ref_rec, atol=1e-5, rtol=1e-5)

    # Exercise the batch-padding + multi-step (megacore) grid path.
    x2 = jax.random.normal(k_x2, (10, input_dim_teacher), jnp.float32)
    b2, r2, _ = autoencoder_forward(x2, None, params)
    jax.block_until_ready((b2, r2))
    rb2, rr2 = _reference(x2, params)
    assert b2.shape == (10, bottleneck_dim) and r2.shape == (10, input_dim_teacher)
    assert jnp.allclose(b2, rb2, atol=1e-5, rtol=1e-5)
    assert jnp.allclose(r2, rr2, atol=1e-5, rtol=1e-5)

    # Exercise the feature-padding path (dims not multiples of 128).
    dt3, db3 = 200, 96
    params3 = init_params(k_p2, dt3, db3, input_dim_student)
    x3 = jax.random.normal(k_x3, (12, dt3), jnp.float32)
    b3, r3, _ = autoencoder_forward(x3, None, params3)
    jax.block_until_ready((b3, r3))
    rb3, rr3 = _reference(x3, params3)
    assert b3.shape == (12, db3) and r3.shape == (12, dt3)
    assert jnp.allclose(b3, rb3, atol=1e-5, rtol=1e-5)
    assert jnp.allclose(r3, rr3, atol=1e-5, rtol=1e-5)

    print("KERNEL_OK")
</pallas_src>

<mosaic_0001>
module attributes {stable_mosaic.version = 11 : i64} {
  func.func @_autoencoder_kernel(%arg0: i32, %arg1: memref<8x256xf32, #tpu.memory_space<vmem>>, %arg2: memref<256x128xf32, #tpu.memory_space<vmem>>, %arg3: memref<1x128xf32, #tpu.memory_space<vmem>>, %arg4: memref<128x256xf32, #tpu.memory_space<vmem>>, %arg5: memref<1x256xf32, #tpu.memory_space<vmem>>, %arg6: memref<8x128xf32, #tpu.memory_space<vmem>>, %arg7: memref<8x256xf32, #tpu.memory_space<vmem>>) attributes {dimension_semantics = [#tpu.dimension_semantics<parallel>], iteration_bounds = array<i64: 1>, scalar_prefetch = 0 : i64, scratch_operands = 0 : i64, tpu.core_type = #tpu.core_type<tc>, window_params = [{transform_indices = @transform_0, window_bounds = array<i64: 8, 256>}, {pipeline_mode = #tpu.pipeline_mode<synchronous>, transform_indices = @transform_1, window_bounds = array<i64: 256, 128>}, {pipeline_mode = #tpu.pipeline_mode<synchronous>, transform_indices = @transform_2, window_bounds = array<i64: 1, 128>}, {pipeline_mode = #tpu.pipeline_mode<synchronous>, transform_indices = @transform_3, window_bounds = array<i64: 128, 256>}, {pipeline_mode = #tpu.pipeline_mode<synchronous>, transform_indices = @transform_4, window_bounds = array<i64: 1, 256>}, {transform_indices = @transform_5, window_bounds = array<i64: 8, 128>}, {transform_indices = @transform_6, window_bounds = array<i64: 8, 256>}]} {
    %c0 = arith.constant 0 : index
    %c0_0 = arith.constant 0 : index
    %0 = vector.load %arg1[%c0, %c0_0] : memref<8x256xf32, #tpu.memory_space<vmem>>, vector<8x256xf32>
    %c0_1 = arith.constant 0 : index
    %c0_2 = arith.constant 0 : index
    %1 = vector.load %arg2[%c0_1, %c0_2] : memref<256x128xf32, #tpu.memory_space<vmem>>, vector<256x128xf32>
    %cst = arith.constant dense<0.000000e+00> : vector<8x128xf32>
    %2 = tpu.matmul %0, %1, %cst {dimension_numbers = #tpu.dot_dimension_numbers<[1], [0], [0], [1], [0, 0, 1, 1], [], []>} : vector<8x256xf32>, vector<256x128xf32>, vector<8x128xf32> -> vector<8x128xf32>
    %c0_3 = arith.constant 0 : index
    %c0_4 = arith.constant 0 : index
    %3 = vector.load %arg3[%c0_3, %c0_4] : memref<1x128xf32, #tpu.memory_space<vmem>>, vector<1x128xf32>
    %4 = vector.broadcast %3 : vector<1x128xf32> to vector<8x128xf32>
    %5 = arith.addf %2, %4 : vector<8x128xf32>
    %cst_5 = arith.constant 0.000000e+00 : f32
    %6 = vector.broadcast %cst_5 : f32 to vector<8x128xf32>
    %7 = arith.maximumf %5, %6 : vector<8x128xf32>
    %c0_6 = arith.constant 0 : index
    %c0_7 = arith.constant 0 : index
    %8 = vector.load %arg6[%c0_6, %c0_7] : memref<8x128xf32, #tpu.memory_space<vmem>>, vector<8x128xf32>
    tpu.vector_store %arg6[%c0_6, %c0_7], %7 {strides = array<i32>} : memref<8x128xf32, #tpu.memory_space<vmem>>, vector<8x128xf32>,
    %c0_8 = arith.constant 0 : index
    %c0_9 = arith.constant 0 : index
    %9 = vector.load %arg4[%c0_8, %c0_9] : memref<128x256xf32, #tpu.memory_space<vmem>>, vector<128x256xf32>
    %cst_10 = arith.constant dense<0.000000e+00> : vector<8x256xf32>
    %10 = tpu.matmul %7, %9, %cst_10 {dimension_numbers = #tpu.dot_dimension_numbers<[1], [0], [0], [1], [0, 0, 1, 1], [], []>} : vector<8x128xf32>, vector<128x256xf32>, vector<8x256xf32> -> vector<8x256xf32>
    %c0_11 = arith.constant 0 : index
    %c0_12 = arith.constant 0 : index
    %11 = vector.load %arg5[%c0_11, %c0_12] : memref<1x256xf32, #tpu.memory_space<vmem>>, vector<1x256xf32>
    %12 = vector.broadcast %11 : vector<1x256xf32> to vector<8x256xf32>
    %13 = arith.addf %10, %12 : vector<8x256xf32>
    %cst_13 = arith.constant 0.000000e+00 : f32
    %14 = vector.broadcast %cst_13 : f32 to vector<8x256xf32>
    %15 = arith.maximumf %13, %14 : vector<8x256xf32>
    %c0_14 = arith.constant 0 : index
    %c0_15 = arith.constant 0 : index
    %16 = vector.load %arg7[%c0_14, %c0_15] : memref<8x256xf32, #tpu.memory_space<vmem>>, vector<8x256xf32>
    tpu.vector_store %arg7[%c0_14, %c0_15], %15 {strides = array<i32>} : memref<8x256xf32, #tpu.memory_space<vmem>>, vector<8x256xf32>,
    return
  }
  func.func @transform_0(%arg0: i32) -> (i32, i32) {
    %c0_i32 = arith.constant 0 : i32
    %c0_i32_0 = arith.constant 0 : i32
    return %arg0, %c0_i32 : i32, i32
  }
  func.func @transform_1(%arg0: i32) -> (i32, i32) {
    %c0_i32 = arith.constant 0 : i32
    %c0_i32_0 = arith.constant 0 : i32
    %c0_i32_1 = arith.constant 0 : i32
    return %c0_i32, %c0_i32_0 : i32, i32
  }
  func.func @transform_2(%arg0: i32) -> (i32, i32) {
    %c0_i32 = arith.constant 0 : i32
    %c0_i32_0 = arith.constant 0 : i32
    %c0_i32_1 = arith.constant 0 : i32
    return %c0_i32, %c0_i32_0 : i32, i32
  }
  func.func @transform_3(%arg0: i32) -> (i32, i32) {
    %c0_i32 = arith.constant 0 : i32
    %c0_i32_0 = arith.constant 0 : i32
    %c0_i32_1 = arith.constant 0 : i32
    return %c0_i32, %c0_i32_0 : i32, i32
  }
  func.func @transform_4(%arg0: i32) -> (i32, i32) {
    %c0_i32 = arith.constant 0 : i32
    %c0_i32_0 = arith.constant 0 : i32
    %c0_i32_1 = arith.constant 0 : i32
    return %c0_i32, %c0_i32_0 : i32, i32
  }
  func.func @transform_5(%arg0: i32) -> (i32, i32) {
    %c0_i32 = arith.constant 0 : i32
    %c0_i32_0 = arith.constant 0 : i32
    return %arg0, %c0_i32 : i32, i32
  }
  func.func @transform_6(%arg0: i32) -> (i32, i32) {
    %c0_i32 = arith.constant 0 : i32
    %c0_i32_0 = arith.constant 0 : i32
    return %arg0, %c0_i32 : i32, i32
  }
}

</mosaic_0001>

<bundles_post_ra>
// kernel: tpu_custom_call.1
= control target key start
LH: loop header
LB: loop body
LE: loop exit
PB: predicated region body
PF: predicated region fallthrough
CT: control target
= control target key end

     0   :  { %12 = vsyncpa [#allocation3], 0  ;;  %s664_s0 = inlined_call_operand.hbm [shape: f32[8,256], index: 0, kind: input, shape index: {}]   ;;  %s665_s1 = inlined_call_operand.hbm [shape: f32[256,128], index: 1, kind: input, shape index: {}]   ;;  %s666_s2 = inlined_call_operand.vmem [shape: f32[1,128], index: 2, kind: input, shape index: {}]   ;;  %s667_s3 = inlined_call_operand.hbm [shape: f32[128,256], index: 3, kind: input, shape index: {}]   ;;  %s668_s4 = inlined_call_operand.vmem [shape: f32[1,256], index: 4, kind: input, shape index: {}]   ;;  %s669_s5 = inlined_call_operand.hbm [shape: f32[8,128], index: 5, kind: output, shape index: {0}]   ;;  %s670_s6 = inlined_call_operand.hbm [shape: f32[8,256], index: 6, kind: output, shape index: {1}]  }
   0x1   :  { %13 = vsyncpa [#allocation6], 0 }
   0x2   :  { %14 = vsyncpa [#allocation4], 0 }
   0x3   :  { %15 = vsyncpa [#allocation10], 0  ;;  %s553_s21 = smov [#allocation5]   ;;  %s435_s25 = scalar_lea.hbm %s665_s1, 4096 }
   0x4   :  { %s31_s22 = sshll.u32 %s553_s21, 4  ;;  %p436_p0 = scmp.ne.s32.totalorder %s665_s1, %s435_s25  ;;  %s32_s22 = int_to_ptr.vmem [resolvable:$true] %s31_s22 }
   0x5   :  { %p439_p1 = scmp.lt.u32.totalorder %s435_s25, %s665_s1 }
   0x7   :  { %p441_p2 = pnand %p439_p1, %p436_p0 }
   0x9   :  { %444 = shalt.err (!%p441_p2)
}
   0xa   :  { %s445_s30 = scalar_lea.vmem %s32_s22, 4096  ;;  %p450_p4 = scmp.lt.s32.totalorder %s32_s22, %s32_s22 }
   0xb   :  { %p446_p3 = scmp.ne.s32.totalorder %s32_s22, %s445_s30  ;;  %p451_p5 = scmp.lt.s32.totalorder %s445_s30, %s445_s30 }
   0xd   :  { %p452_p6 = por %p451_p5, %p450_p4 }
   0xf   :  { %p453_p7 = pnand %p452_p6, %p446_p3 }
  0x11   :  { %456 = shalt.err (!%p453_p7)
}
  0x12   :  { %s554_s7 = smov 128   ;;  %s555_s8 = smov 8  }
  0x13   :  { %37 = dma.hbm_to_vmem [thread:$0]  %s665_s1, 4096, %s32_s22, [#allocation6], %s554_s7, %s554_s7, %s555_s8  }
  0x14   :  { %s556_s11 = smov [#allocation2]   ;;  %s557_s13 = smov [#allocation7]  }
  0x15   :  { %s22_s12 = sshll.u32 %s556_s11, 4  ;;  %s45_s14 = sshll.u32 %s557_s13, 4  ;;  %s23_s12 = int_to_ptr.vmem [resolvable:$true] %s22_s12  ;;  %s46_s14 = int_to_ptr.vmem [resolvable:$true] %s45_s14 }
  0x16   :  { %s457_s17 = scalar_lea.hbm %s664_s0, 256 }
  0x17   :  { %p458_p8 = scmp.ne.s32.totalorder %s664_s0, %s457_s17  ;;  %p461_p9 = scmp.lt.u32.totalorder %s457_s17, %s664_s0 }
  0x19   :  { %p463_p10 = pnand %p461_p9, %p458_p8 }
  0x1b   :  { %466 = shalt.err (!%p463_p10)
}
  0x1c   :  { %s467_s1 = scalar_lea.vmem %s23_s12, 256  ;;  %p472_p12 = scmp.lt.s32.totalorder %s23_s12, %s23_s12 }
  0x1d   :  { %p468_p11 = scmp.ne.s32.totalorder %s23_s12, %s467_s1  ;;  %p473_p13 = scmp.lt.s32.totalorder %s467_s1, %s467_s1 }
  0x1f   :  { %p474_p0 = por %p473_p13, %p472_p12 }
  0x21   :  { %p475_p1 = pnand %p474_p0, %p468_p11 }
  0x23   :  { %478 = shalt.err (!%p475_p1)
}
  0x24   :  { %25 = dma.hbm_to_vmem [thread:$0]  %s664_s0, 256, %s23_s12, [#allocation3]  }
  0x25   :  { %s479_s26 = scalar_lea.hbm %s667_s3, 4096 }
  0x26   :  { %p480_p2 = scmp.ne.s32.totalorder %s667_s3, %s479_s26  ;;  %p483_p3 = scmp.lt.u32.totalorder %s479_s26, %s667_s3 }
  0x28   :  { %p485_p4 = pnand %p483_p3, %p480_p2 }
  0x2a   :  { %488 = shalt.err (!%p485_p4)
}
  0x2b   :  { %s489_s7 = scalar_lea.vmem %s46_s14, 4096  ;;  %p494_p6 = scmp.lt.s32.totalorder %s46_s14, %s46_s14 }
  0x2c   :  { %p490_p5 = scmp.ne.s32.totalorder %s46_s14, %s489_s7  ;;  %p495_p7 = scmp.lt.s32.totalorder %s489_s7, %s489_s7 }
  0x2e   :  { %p496_p8 = por %p495_p7, %p494_p6 }
  0x30   :  { %p497_p9 = pnand %p496_p8, %p490_p5 }
  0x32   :  { %500 = shalt.err (!%p497_p9)
}
  0x33   :  { %s558_s0 = smov 256   ;;  %s559_s8 = smov 16  }
  0x34   :  { %51 = dma.hbm_to_vmem [thread:$0]  %s667_s3, 4096, %s46_s14, [#allocation6], %s558_s0, %s558_s0, %s559_s8  }
  0x35   :  { %545 = dma.done.wait [#allocation3], 256  }
  0x36   :  { %546 = vsyncadd [#allocation3], 4294967040 }
  0x37   :  { %547 = dma.done.wait [#allocation6], 8192  }
  0x38   :  { %548 = vsyncadd [#allocation6], 4294959104  ;;  %v81_v0 = vld [vmem:[#allocation5 + $0x80] sm:$0xff]  ;;  %v82_v1 = vld [vmem:[#allocation5 + $0x88] sm:$0xff]  ;;  %s561_s12 = smov [#allocation8]  }
  0x39   :  { %v65_v2 = vld [vmem:[#allocation5] sm:$0xff]  ;;  %v361_v3 = vpack.c.bf16 %v82_v1, %v81_v0  ;;  %v66_v4 = vld [vmem:[#allocation5 + $0x8] sm:$0xff]  ;;  %v83_v5 = vld [vmem:[#allocation5 + $0x90] sm:$0xff]  ;;  %s301_s13 = sshll.u32 %s561_s12, 4  ;;  %s302_s13 = int_to_ptr.vmem [resolvable:$true] %s301_s13 }
  0x3a   :  { %v84_v6 = vld [vmem:[#allocation5 + $0x98] sm:$0xff]  ;;  %v363_v7 = vpack.c.bf16 %v66_v4, %v65_v2  ;;  %v67_v9 = vld [vmem:[#allocation5 + $0x10] sm:$0xff]  ;;  %v85_v11 = vld [vmem:[#allocation5 + $0xa0] sm:$0xff]  ;;  %s501_s14 = scalar_lea.vmem %s302_s13, 128  ;;  %p506_p11 = scmp.lt.s32.totalorder %s302_s13, %s302_s13 }
  0x3b   :  { %v365_v8 = vpack.c.bf16 %v84_v6, %v83_v5  ;;  %v68_v10 = vld [vmem:[#allocation5 + $0x18] sm:$0xff]  ;;  %362 = vmatprep.subr.bf16.mxu0 %v361_v3  ;;  %v86_v12 = vld [vmem:[#allocation5 + $0xa8] sm:$0xff]  ;;  %v69_v15 = vld [vmem:[#allocation5 + $0x20] sm:$0xff]  ;;  %p502_p10 = scmp.ne.s32.totalorder %s302_s13, %s501_s14  ;;  %p507_p12 = scmp.lt.s32.totalorder %s501_s14, %s501_s14 }
  0x3c   :  { %364 = vmatpush3.bf16.msra.mxu0 %v363_v7  ;;  %v367_v13 = vpack.c.bf16 %v68_v10, %v67_v9  ;;  %v369_v14 = vpack.c.bf16 %v86_v12, %v85_v11  ;;  %v70_v16 = vld [vmem:[#allocation5 + $0x28] sm:$0xff]  ;;  %v87_v17 = vld [vmem:[#allocation5 + $0xb0] sm:$0xff]  ;;  %v88_v18 = vld [vmem:[#allocation5 + $0xb8] sm:$0xff] }
  0x3d   :  { %366 = vmatprep.subr.bf16.mxu0 %v365_v8  ;;  %v371_v19 = vpack.c.bf16 %v70_v16, %v69_v15  ;;  %v373_v20 = vpack.c.bf16 %v88_v18, %v87_v17  ;;  %v71_v21 = vld [vmem:[#allocation5 + $0x30] sm:$0xff]  ;;  %v72_v22 = vld [vmem:[#allocation5 + $0x38] sm:$0xff]  ;;  %v89_v23 = vld [vmem:[#allocation5 + $0xc0] sm:$0xff]  ;;  %p508_p13 = por %p507_p12, %p506_p11 }
  0x3e   :  { %v90_v24 = vld [vmem:[#allocation5 + $0xc8] sm:$0xff]  ;;  %v64_v25 = vld [vmem:[#allocation2 + $0x8] sm:$0xff]  ;;  %v73_v26 = vld [vmem:[#allocation5 + $0x40] sm:$0xff]  ;;  %v375_v30 = vpack.c.bf16 %v72_v22, %v71_v21 }
  0x3f   :  { %v74_v27 = vld [vmem:[#allocation5 + $0x48] sm:$0xff]  ;;  %168 = vmatprep.mubr.f32.mxu0 %v64_v25  ;;  %v179_v29 = vld [vmem:[#allocation7 + $0x18] sm:$0xff]  ;;  %v91_v31 = vld [vmem:[#allocation5 + $0xd0] sm:$0xff]  ;;  %v377_v36 = vpack.c.bf16 %v90_v24, %v89_v23  ;;  %p509_p0 = pnand %p508_p13, %p502_p10 }
  0x40   :  { %368 = vmatpush3.bf16.msra.mxu0 %v367_v13  ;;  %v177_v28 = vld [vmem:[#allocation7 + $0x8] sm:$0xff]  ;;  %v176_v33 = vld [vmem:[#allocation7] sm:$0xff]  ;;  %v178_v34 = vld [vmem:[#allocation7 + $0x10] sm:$0xff]  ;;  %v379_v46 = vpack.c.bf16 %v74_v27, %v73_v26 }
  0x41   :  { %370 = vmatprep.subr.bf16.mxu0 %v369_v14  ;;  %v393_v32 = vpack.c.bf16 %v179_v29, %v177_v28  ;;  %v181_v35 = vld [vmem:[#allocation7 + $0x28] sm:$0xff]  ;;  %v395_v37 = vpack.c.bf16 %v178_v34, %v176_v33  ;;  %v183_v38 = vld [vmem:[#allocation7 + $0x38] sm:$0xff]  ;;  %v180_v39 = vld [vmem:[#allocation7 + $0x20] sm:$0xff]  ;;  %v560_v34 = vmov 0.0  }
  0x42   :  { %v182_v40 = vld [vmem:[#allocation7 + $0x30] sm:$0xff]  ;;  %v92_v41 = vld [vmem:[#allocation5 + $0xd8] sm:$0xff]  ;;  %v397_v42 = vpack.c.bf16 %v183_v38, %v181_v35  ;;  %v185_v43 = vld [vmem:[#allocation7 + $0x48] sm:$0xff]  ;;  %284 = vmatprep.mubr.f32.mxu1 %v560_v34 }
  0x43   :  { %394 = vmatprep.subr.bf16.mxu1 %v393_v32  ;;  %v187_v44 = vld [vmem:[#allocation7 + $0x58] sm:$0xff]  ;;  %v399_v45 = vpack.c.bf16 %v182_v40, %v180_v39  ;;  %v75_v47 = vld [vmem:[#allocation5 + $0x50] sm:$0xff]  ;;  %v184_v49 = vld [vmem:[#allocation7 + $0x40] sm:$0xff]  ;;  %v381_v51 = vpack.c.bf16 %v92_v41, %v91_v31 }
  0x44   :  { %372 = vmatpush3.bf16.msra.mxu0 %v371_v19  ;;  %396 = vmatpush1.bf16.msra.mxu1 %v395_v37  ;;  %v401_v48 = vpack.c.bf16 %v187_v44, %v185_v43  ;;  %v186_v50 = vld [vmem:[#allocation7 + $0x50] sm:$0xff]  ;;  %v76_v52 = vld [vmem:[#allocation5 + $0x58] sm:$0xff]  ;;  %v189_v53 = vld [vmem:[#allocation7 + $0x68] sm:$0xff] }
  0x45   :  { %374 = vmatprep.subr.bf16.mxu0 %v373_v20  ;;  %398 = vmatprep.subr.bf16.mxu1 %v397_v42  ;;  %v191_v54 = vld [vmem:[#allocation7 + $0x78] sm:$0xff]  ;;  %v93_v55 = vld [vmem:[#allocation5 + $0xe0] sm:$0xff]  ;;  %v94_v56 = vld [vmem:[#allocation5 + $0xe8] sm:$0xff]  ;;  %v403_v57 = vpack.c.bf16 %v186_v50, %v184_v49  ;;  %v383_v58 = vpack.c.bf16 %v76_v52, %v75_v47 }
  0x46   :  { %v77_v59 = vld [vmem:[#allocation5 + $0x60] sm:$0xff]  ;;  %v405_v60 = vpack.c.bf16 %v191_v54, %v189_v53  ;;  %v190_v62 = vld [vmem:[#allocation7 + $0x70] sm:$0xff]  ;;  %v385_v63 = vpack.c.bf16 %v94_v56, %v93_v55  ;;  %v78_v0 = vld [vmem:[#allocation5 + $0x68] sm:$0xff] }
  0x47   :  { %v188_v61 = vld [vmem:[#allocation7 + $0x60] sm:$0xff]  ;;  %v193_v1 = vld [vmem:[#allocation7 + $0x88] sm:$0xff]  ;;  %v195_v2 = vld [vmem:[#allocation7 + $0x98] sm:$0xff]  ;;  %v387_v6 = vpack.c.bf16 %v78_v0, %v77_v59 }
  0x48   :  { %376 = vmatpush3.bf16.msra.mxu0 %v375_v30  ;;  %400 = vmatpush1.bf16.msra.mxu1 %v399_v45  ;;  %v95_v3 = vld [vmem:[#allocation5 + $0xf0] sm:$0xff]  ;;  %v96_v4 = vld [vmem:[#allocation5 + $0xf8] sm:$0xff]  ;;  %v407_v5 = vpack.c.bf16 %v190_v62, %v188_v61  ;;  %v409_v8 = vpack.c.bf16 %v195_v2, %v193_v1  ;;  %v192_v9 = vld [vmem:[#allocation7 + $0x80] sm:$0xff] }
  0x49   :  { %378 = vmatprep.subr.bf16.mxu0 %v377_v36  ;;  %402 = vmatprep.subr.bf16.mxu1 %v401_v48  ;;  %v79_v7 = vld [vmem:[#allocation5 + $0x70] sm:$0xff]  ;;  %v389_v11 = vpack.c.bf16 %v96_v4, %v95_v3  ;;  %v80_v12 = vld [vmem:[#allocation5 + $0x78] sm:$0xff]  ;;  %v197_v13 = vld [vmem:[#allocation7 + $0xa8] sm:$0xff] }
  0x4a   :  { %v194_v10 = vld [vmem:[#allocation7 + $0x90] sm:$0xff]  ;;  %v199_v14 = vld [vmem:[#allocation7 + $0xb8] sm:$0xff]  ;;  %v391_v16 = vpack.c.bf16 %v80_v12, %v79_v7  ;;  %v196_v18 = vld [vmem:[#allocation7 + $0xa0] sm:$0xff] }
  0x4b   :  { %v411_v15 = vpack.c.bf16 %v194_v10, %v192_v9  ;;  %v413_v17 = vpack.c.bf16 %v199_v14, %v197_v13  ;;  %v198_v19 = vld [vmem:[#allocation7 + $0xb0] sm:$0xff]  ;;  %v201_v22 = vld [vmem:[#allocation7 + $0xc8] sm:$0xff]  ;;  %v203_v23 = vld [vmem:[#allocation7 + $0xd8] sm:$0xff] }
  0x4c   :  { %380 = vmatpush3.bf16.msra.mxu0 %v379_v46  ;;  %404 = vmatpush1.bf16.msra.mxu1 %v403_v57  ;;  %v415_v20 = vpack.c.bf16 %v198_v19, %v196_v18  ;;  %v63_v21 = vld [vmem:[#allocation2] sm:$0xff]  ;;  %v417_v24 = vpack.c.bf16 %v203_v23, %v201_v22  ;;  %v200_v25 = vld [vmem:[#allocation7 + $0xc0] sm:$0xff]  ;;  %v205_v28 = vld [vmem:[#allocation7 + $0xe8] sm:$0xff] }
  0x4d   :  { %382 = vmatprep.subr.bf16.mxu0 %v381_v51  ;;  %406 = vmatprep.subr.bf16.mxu1 %v405_v60  ;;  %v202_v26 = vld [vmem:[#allocation7 + $0xd0] sm:$0xff]  ;;  %v207_v29 = vld [vmem:[#allocation7 + $0xf8] sm:$0xff]  ;;  %v204_v31 = vld [vmem:[#allocation7 + $0xe0] sm:$0xff] }
  0x4e   :  { %v419_v27 = vpack.c.bf16 %v202_v26, %v200_v25  ;;  %v421_v30 = vpack.c.bf16 %v207_v29, %v205_v28  ;;  %v206_v32 = vld [vmem:[#allocation7 + $0xf0] sm:$0xff] }
  0x4f   :  { %v423_v33 = vpack.c.bf16 %v206_v32, %v204_v31  ;;  %v325_v36 = vld [vmem:[%s666_s2] ss:$0 sm:$0xff] }
  0x50   :  { %384 = vmatpush3.bf16.msra.mxu0 %v383_v58  ;;  %408 = vmatpush1.bf16.msra.mxu1 %v407_v5 }
  0x51   :  { %386 = vmatprep.subr.bf16.mxu0 %v385_v63  ;;  %410 = vmatprep.subr.bf16.mxu1 %v409_v8 }
  0x54   :  { %388 = vmatpush3.bf16.msra.mxu0 %v387_v6  ;;  %412 = vmatpush1.bf16.msra.mxu1 %v411_v15 }
  0x55   :  { %390 = vmatprep.subr.bf16.mxu0 %v389_v11  ;;  %414 = vmatprep.subr.bf16.mxu1 %v413_v17 }
  0x58   :  { %392 = vmatpush3.bf16.msra.mxu0 %v391_v16  ;;  %416 = vmatpush1.bf16.msra.mxu1 %v415_v20 }
  0x59   :  { %418 = vmatprep.subr.bf16.mxu1 %v417_v24 }
  0x5b   :  { %169 = vmatmul.mubr.f32.vlgmr.msra.gmra.mrb[0].mxu0 %v63_v21 }
  0x5c   :  { %420 = vmatpush1.bf16.msra.mxu1 %v419_v27 }
  0x5d   :  { %422 = vmatprep.subr.bf16.mxu1 %v421_v30 }
  0x60   :  { %424 = vmatpush1.bf16.msra.mxu1 %v423_v33 }
 0x12e   :  { %v358_v35 = vpop.f32.mrb[0].mxu0 }
 0x12f   :  { %v359_v37 = vpop.f32.mrb[1].mxu0 }
 0x130   :  { %v360_v38 = vadd.f32 %v359_v37, %v358_v35 }
 0x132   :  { %v171_v39 = vadd.f32 %v360_v38, %v325_v36 }
 0x134   :  { %v174_v40 = vmax.f32 %v171_v39, 0.0 }
 0x136   :  { %175 = vst [vmem:[#allocation8] sm:$0xff] %v174_v40  ;;  %285 = vmatmul.mubr.f32.vlgmr.msra.gmra.mrb[0].mxu1 %v174_v40 }
 0x137   :  { %512 = shalt.err (!%p509_p0)
}
 0x138   :  { %s513_s2 = scalar_lea.hbm %s669_s5, 128 }
 0x139   :  { %p514_p1 = scmp.ne.s32.totalorder %s669_s5, %s513_s2  ;;  %p517_p2 = scmp.lt.u32.totalorder %s513_s2, %s669_s5 }
 0x13b   :  { %p519_p3 = pnand %p517_p2, %p514_p1 }
 0x13d   :  { %522 = shalt.err (!%p519_p3)
}
 0x13e   :  { %304 = dma.vmem_to_hbm [thread:$0]  %s302_s13, 128, %s669_s5, [#allocation4]   ;;  %v210_v41 = vlaneseq  ;;  %v208_v44 = vld [vmem:[%s668_s4] sm:$0x3] }
 0x13f   :  { %s562_s24 = smov [#allocation9]  }
 0x140   :  { %v211_v42 = vshrl.u32 %v210_v41, 7  ;;  %s311_s25 = sshll.u32 %s562_s24, 4  ;;  %s312_s25 = int_to_ptr.vmem [resolvable:$true] %s311_s25 }
 0x141   :  { %s523_s5 = scalar_lea.vmem %s312_s25, 256  ;;  %p528_p5 = scmp.lt.s32.totalorder %s312_s25, %s312_s25 }
 0x142   :  { %v212_v43 = vsub.s32 0, %v211_v42  ;;  %v216_v45 = vsub.s32 1, %v211_v42  ;;  %p524_p4 = scmp.ne.s32.totalorder %s312_s25, %s523_s5  ;;  %p529_p6 = scmp.lt.s32.totalorder %s523_s5, %s523_s5 }
 0x144   :  { %v213_v46 = vrot.slane %v208_v44, %v212_v43  ;;  %v217_v47 = vrot.slane %v208_v44, %v216_v45  ;;  %p530_p7 = por %p529_p6, %p528_p5 }
 0x146   :  { %p531_p8 = pnand %p530_p7, %p524_p4 }
 0x209   :  { %v286_v48 = vpop.f32.mrb[0].mxu1 }
 0x20a   :  { %v287_v49 = vadd.f32 %v286_v48, %v213_v46  ;;  %v288_v50 = vpop.f32.mrb[1].mxu1 }
 0x20b   :  { %v289_v51 = vadd.f32 %v288_v50, %v217_v47 }
 0x20c   :  { %v291_v52 = vmax.f32 %v287_v49, 0.0 }
 0x20d   :  { %v292_v53 = vmax.f32 %v289_v51, 0.0 }
 0x20e   :  { %293 = vst [vmem:[#allocation9] sm:$0xff] %v291_v52 }
 0x20f   :  { %294 = vst [vmem:[#allocation9 + $0x8] sm:$0xff] %v292_v53 }
 0x210   :  { %534 = shalt.err (!%p531_p8)
}
 0x211   :  { %s535_s27 = scalar_lea.hbm %s670_s6, 256 }
 0x212   :  { %p536_p9 = scmp.ne.s32.totalorder %s670_s6, %s535_s27  ;;  %p539_p10 = scmp.lt.u32.totalorder %s535_s27, %s670_s6 }
 0x214   :  { %p541_p11 = pnand %p539_p10, %p536_p9 }
 0x216   :  { %544 = shalt.err (!%p541_p11)
}
 0x217   :  { %314 = dma.vmem_to_hbm [thread:$0]  %s312_s25, 256, %s670_s6, [#allocation10]  }
 0x218   :  { %549 = dma.done.wait [#allocation4], 128  }
 0x219   :  { %550 = vsyncadd [#allocation4], 4294967168 }
 0x21a   :  { %551 = dma.done.wait [#allocation10], 256  }
 0x21b   :  { %552 = vsyncadd [#allocation10], 4294967040 }
 0x21c   :  { %321 = vsyncpa [#allocation3], 1 }
 0x21d   :  { %322 = vsyncpa [#allocation6], 1 }
 0x21e   :  { %323 = vsyncpa [#allocation4], 1 }
 0x21f   :  { %324 = vsyncpa [#allocation10], 1 }

</bundles_post_ra>
